<compile_context>
chip_gen: v7x
topology: tpu7x:2x2x1
jax: 0.10.0
libtpu: 0.0.40
codegen_flags: <defaults>
</compile_context>

<pallas_src>
import functools

import numpy as np
import jax
import jax.numpy as jnp
from jax import lax
from jax.experimental import pallas as pl
from jax.experimental.pallas import tpu as pltpu

# ----------------------------- config (small demo shapes) ---------------------
CHANNELS_NUM = 16      # N  (PyTorch default 64; small for the demo)
NUM_FEATURES = 128     # F  (num_features)
GRAPH_KERNEL = 5       # K  (graph_convolution_kernel)
BATCH = 2              # B
ATTN_DK = 4            # d_k (width of weight_key / weight_query)
BN_EPS = 1e-5
BN_SCALE = 1.0 / float(np.sqrt(1.0 + BN_EPS))   # BatchNorm2d eval w/ fresh stats


def _vmem_spec():
    return pl.BlockSpec(memory_space=pltpu.MemorySpace.VMEM)


# ----------------------------- kernel 1: latent_correlation_layer -------------
def _adjacency_kernel(x_ref, m_ref, adj_ref):
    """Batched graph self-attention over all B, batch-mean, symmetrize."""
    B, N, F = x_ref.shape
    x = x_ref[...]                                          # (B, N, F)
    M = m_ref[...]                                          # (F, F) = Wq @ Wk^T / sqrt(d_k)

    # Lane-dense (B*N, F) @ (F, F) MXU push (F=128-deep contraction) for all batches.
    xm = jnp.dot(x.reshape(B * N, F), M,
                 preferred_element_type=jnp.float32).reshape(B, N, F)

    # scores[b] = (x[b] @ M) @ x[b]^T  -- one batched contraction, no per-b Python loop.
    s = jnp.einsum('bnf,bmf->bnm', xm, x,
                   preferred_element_type=jnp.float32)      # (B, N, N)
    s = jnp.where(s >= 0.0, s, 0.2 * s)                     # LeakyReLU(0.2)
    s = s - jnp.max(s, axis=-1, keepdims=True)              # softmax over dim=2
    e = jnp.exp(s)
    attn = e * pl.reciprocal(jnp.sum(e, axis=-1, keepdims=True), approx=True)
    # TODO(synk): Dropout(p=0.4) is identity in eval/inference mode.

    a = jnp.mean(attn, axis=0)                              # torch.mean over batch (N, N)
    adj_ref[...] = 0.5 * (a + a.T)                          # symmetrize


def compute_adjacency(x, attn_m):
    _, N, _ = x.shape
    return pl.pallas_call(
        _adjacency_kernel,
        out_shape=jax.ShapeDtypeStruct((N, N), jnp.float32),
        in_specs=[_vmem_spec(), _vmem_spec()],
        out_specs=_vmem_spec(),
    )(x, attn_m)


# ------------------- kernel 2: spectral filter + graph conv (fused) -----------
def _fused_spectral_gconv_kernel(vets_ref, g_ref, x_ref, out_ref, *, bn_scale):
    """adj_k[k] = V diag(g_k) V^T ;  out[k*N+n, b] = mean_F( BN_eval( relu( adj_k @ x[b] ) ) ).

    adj_k (K, N, N) stays in VMEM/vregs; it is never written back to HBM.
    Output is column-major over batch (K*N, B): no sublane->lane transpose/concat.
    """
    V = vets_ref[...]                                       # (N, N)
    g = g_ref[...]                                          # (K, N)
    K, N = g.shape
    B, _, F = x_ref.shape

    # V @ diag(g_k) for all k, stacked:  scaled[k*N + i, n] = V[i, n] * g[k, n]
    scaled = (V[None, :, :] * g[:, None, :]).reshape(K * N, N)        # (K*N, N)
    # adj_flat = scaled @ V^T as one transposed-RHS MXU push.
    adj_flat = lax.dot_general(scaled, V, (((1,), (1,)), ((), ())),
                               preferred_element_type=jnp.float32)    # (K*N, N)

    ones_f = jnp.ones((F, 1), jnp.float32)                  # hoisted out of the b-loop
    col_scale = bn_scale / float(F)                         # BN(eval) * mean(1/F)
    for b in range(B):                                      # B small & static -> unrolled
        yb = jnp.dot(adj_flat, x_ref[b],
                     preferred_element_type=jnp.float32)    # (K*N, F)
        yb = jnp.maximum(yb, 0.0)                           # ReLU
        # F-mean as an MXU matvec; write the batch column directly (no XLU relayout).
        out_ref[:, b:b + 1] = jnp.dot(yb, ones_f,
                                      preferred_element_type=jnp.float32) * col_scale


def fused_spectral_graph_conv(e_vets, g_diag, x, bn_scale=BN_SCALE):
    B, N, _ = x.shape
    K = g_diag.shape[0]
    kern = functools.partial(_fused_spectral_gconv_kernel, bn_scale=float(bn_scale))
    return pl.pallas_call(
        kern,
        out_shape=jax.ShapeDtypeStruct((K * N, B), jnp.float32),
        in_specs=[_vmem_spec(), _vmem_spec(), _vmem_spec()],
        out_specs=_vmem_spec(),
    )(e_vets, g_diag, x)


# ----------------------------- host eig (no TPU equivalent) -------------------
def _host_eig_vets(adj):
    # TODO(synk): torch.linalg.eig of the non-symmetric Laplacian-like matrix
    # (deg[j] - adj[i,j], PyTorch row-vector broadcast) has no Pallas/TPU
    # equivalent; formed + decomposed on host, real parts kept.
    adj = np.asarray(adj)
    deg = adj.sum(axis=0)                        # torch.sum(adjacency, dim=0)
    lap = deg[None, :] - adj                     # D - adjacency (broadcast form)
    _vals, vets = np.linalg.eig(lap)
    return np.ascontiguousarray(np.real(vets)).astype(np.float32)


# ----------------------------- full forward (single jitted dispatch) ----------
@jax.jit
def my_graph_convolution_forward(x, attn_m, graph_kernel_param):
    """Reproduces MyGraphConvolution.forward: returns (out (B,1,K,N), adjacency (N,N))."""
    B, N, _ = x.shape
    K = graph_kernel_param.shape[0]

    # 1) adjacency = latent_correlation_layer(x)   (Pallas, grid-less)
    adjacency = compute_adjacency(x, attn_m)

    # 2) eigendecomposition on host; only the ~1 KiB adjacency crosses the PCIe link.
    e_vets = jax.pure_callback(
        _host_eig_vets, jax.ShapeDtypeStruct((N, N), jnp.float32), adjacency)

    # 3+4) spectral filter + graph conv + ReLU + BN(eval) + mean over F  (fused Pallas)
    g_diag = graph_kernel_param[:, 0, :]                    # (K, N)
    out_cols = fused_spectral_graph_conv(e_vets, g_diag, x)            # (K*N, B)

    # Cheap (640 B) relayout in the wrapper: (K*N, B) -> (B, 1, K, N).
    out = jnp.transpose(out_cols.reshape(K, N, B), (2, 0, 1))[:, None, :, :]
    return out, adjacency


# ----------------------------- deterministic parameter init --------------------
def init_params(rng_key):
    N, F, K, dk = CHANNELS_NUM, NUM_FEATURES, GRAPH_KERNEL, ATTN_DK
    k1, k2, k3 = jax.random.split(rng_key, 3)

    # weight_key / weight_query: (F, 4), xavier_uniform gain=1.414
    bound = 1.414 * np.sqrt(6.0 / (F + dk))
    w_key = jax.random.uniform(k1, (F, dk), jnp.float32, -bound, bound)
    w_query = jax.random.uniform(k2, (F, dk), jnp.float32, -bound, bound)

    # x-independent attention matrix, precomputed ONCE (not per forward):
    #   scores = (x Wq)(x Wk)^T / sqrt(d_k) = x (Wq Wk^T / sqrt(d_k)) x^T
    attn_m = (w_query @ w_key.T) / np.sqrt(float(dk))       # (F, F)

    # graph_kernel: (K, 1, N), xavier_normal gain=1 (fan_in=1*N, fan_out=K*N)
    std = np.sqrt(2.0 / (1 * N + K * N))
    graph_kernel = std * jax.random.normal(k3, (K, 1, N), jnp.float32)

    return attn_m, graph_kernel


if __name__ == "__main__":
    root = jax.random.PRNGKey(0)
    k_params, k_x = jax.random.split(root)

    attn_m, graph_kernel = init_params(k_params)
    x = jax.random.normal(k_x, (BATCH, CHANNELS_NUM, NUM_FEATURES), jnp.float32)

    out, adjacency = my_graph_convolution_forward(x, attn_m, graph_kernel)
    out = jax.block_until_ready(out)
    adjacency = jax.block_until_ready(adjacency)

    assert out.shape == (BATCH, 1, GRAPH_KERNEL, CHANNELS_NUM), out.shape
    assert adjacency.shape == (CHANNELS_NUM, CHANNELS_NUM), adjacency.shape
    assert bool(jnp.all(jnp.isfinite(out))) and bool(jnp.all(jnp.isfinite(adjacency)))

    print("KERNEL_OK")
</pallas_src>

<mosaic_0001>
module attributes {stable_mosaic.version = 11 : i64} {
  func.func @_fused_spectral_gconv_kernel(%arg0: memref<16x16xf32, #tpu.memory_space<vmem>>, %arg1: memref<5x16xf32, #tpu.memory_space<vmem>>, %arg2: memref<2x16x128xf32, #tpu.memory_space<vmem>>, %arg3: memref<80x2xf32, #tpu.memory_space<vmem>>) attributes {dimension_semantics = [], scalar_prefetch = 0 : i64, scratch_operands = 0 : i64, tpu.core_type = #tpu.core_type<tc>} {
    %c0 = arith.constant 0 : index
    %c0_0 = arith.constant 0 : index
    %0 = vector.load %arg0[%c0, %c0_0] : memref<16x16xf32, #tpu.memory_space<vmem>>, vector<16x16xf32>
    %c0_1 = arith.constant 0 : index
    %c0_2 = arith.constant 0 : index
    %1 = vector.load %arg1[%c0_1, %c0_2] : memref<5x16xf32, #tpu.memory_space<vmem>>, vector<5x16xf32>
    %2 = vector.shape_cast %0 : vector<16x16xf32> to vector<1x16x16xf32>
    %3 = vector.shape_cast %1 : vector<5x16xf32> to vector<5x1x16xf32>
    %4 = vector.broadcast %2 : vector<1x16x16xf32> to vector<5x16x16xf32>
    %5 = vector.broadcast %3 : vector<5x1x16xf32> to vector<5x16x16xf32>
    %6 = arith.mulf %4, %5 : vector<5x16x16xf32>
    %7 = vector.shape_cast %6 : vector<5x16x16xf32> to vector<80x16xf32>
    %cst = arith.constant dense<0.000000e+00> : vector<80x16xf32>
    %8 = tpu.matmul %7, %0, %cst {dimension_numbers = #tpu.dot_dimension_numbers<[1], [1], [0], [0], [0, 0, 1, 0], [], []>} : vector<80x16xf32>, vector<16x16xf32>, vector<80x16xf32> -> vector<80x16xf32>
    %cst_3 = arith.constant 1.000000e+00 : f32
    %9 = vector.broadcast %cst_3 : f32 to vector<128x1xf32>
    %c0_4 = arith.constant 0 : index
    %c0_5 = arith.constant 0 : index
    %c0_6 = arith.constant 0 : index
    %10 = vector.load %arg2[%c0_4, %c0_5, %c0_6] : memref<2x16x128xf32, #tpu.memory_space<vmem>>, vector<1x16x128xf32>
    %11 = vector.shape_cast %10 : vector<1x16x128xf32> to vector<16x128xf32>
    %cst_7 = arith.constant dense<0.000000e+00> : vector<80x128xf32>
    %12 = tpu.matmul %8, %11, %cst_7 {dimension_numbers = #tpu.dot_dimension_numbers<[1], [0], [0], [1], [0, 0, 1, 1], [], []>} : vector<80x16xf32>, vector<16x128xf32>, vector<80x128xf32> -> vector<80x128xf32>
    %cst_8 = arith.constant 0.000000e+00 : f32
    %13 = vector.broadcast %cst_8 : f32 to vector<80x128xf32>
    %14 = arith.maximumf %12, %13 : vector<80x128xf32>
    %cst_9 = arith.constant dense<0.000000e+00> : vector<80x1xf32>
    %15 = tpu.matmul %14, %9, %cst_9 {dimension_numbers = #tpu.dot_dimension_numbers<[1], [0], [0], [1], [0, 0, 1, 1], [], []>} : vector<80x128xf32>, vector<128x1xf32>, vector<80x1xf32> -> vector<80x1xf32>
    %cst_10 = arith.constant 0.00781246088 : f32
    %16 = vector.broadcast %cst_10 : f32 to vector<80x1xf32>
    %17 = arith.mulf %15, %16 : vector<80x1xf32>
    %c0_11 = arith.constant 0 : index
    %c0_12 = arith.constant 0 : index
    %18 = vector.load %arg3[%c0_11, %c0_12] : memref<80x2xf32, #tpu.memory_space<vmem>>, vector<80x1xf32>
    tpu.vector_store %arg3[%c0_11, %c0_12], %17 {strides = array<i32>} : memref<80x2xf32, #tpu.memory_space<vmem>>, vector<80x1xf32>,
    %c1 = arith.constant 1 : index
    %c0_13 = arith.constant 0 : index
    %c0_14 = arith.constant 0 : index
    %19 = vector.load %arg2[%c1, %c0_13, %c0_14] : memref<2x16x128xf32, #tpu.memory_space<vmem>>, vector<1x16x128xf32>
    %20 = vector.shape_cast %19 : vector<1x16x128xf32> to vector<16x128xf32>
    %cst_15 = arith.constant dense<0.000000e+00> : vector<80x128xf32>
    %21 = tpu.matmul %8, %20, %cst_15 {dimension_numbers = #tpu.dot_dimension_numbers<[1], [0], [0], [1], [0, 0, 1, 1], [], []>} : vector<80x16xf32>, vector<16x128xf32>, vector<80x128xf32> -> vector<80x128xf32>
    %cst_16 = arith.constant 0.000000e+00 : f32
    %22 = vector.broadcast %cst_16 : f32 to vector<80x128xf32>
    %23 = arith.maximumf %21, %22 : vector<80x128xf32>
    %cst_17 = arith.constant dense<0.000000e+00> : vector<80x1xf32>
    %24 = tpu.matmul %23, %9, %cst_17 {dimension_numbers = #tpu.dot_dimension_numbers<[1], [0], [0], [1], [0, 0, 1, 1], [], []>} : vector<80x128xf32>, vector<128x1xf32>, vector<80x1xf32> -> vector<80x1xf32>
    %cst_18 = arith.constant 0.00781246088 : f32
    %25 = vector.broadcast %cst_18 : f32 to vector<80x1xf32>
    %26 = arith.mulf %24, %25 : vector<80x1xf32>
    %c0_19 = arith.constant 0 : index
    %c1_20 = arith.constant 1 : index
    %27 = vector.load %arg3[%c0_19, %c1_20] : memref<80x2xf32, #tpu.memory_space<vmem>>, vector<80x1xf32>
    tpu.vector_store %arg3[%c0_19, %c1_20], %26 {strides = array<i32>} : memref<80x2xf32, #tpu.memory_space<vmem>>, vector<80x1xf32>,
    return
  }
}

module attributes {stable_mosaic.version = 11 : i64} {
  func.func @_adjacency_kernel(%arg0: memref<2x16x128xf32, #tpu.memory_space<vmem>>, %arg1: memref<128x128xf32, #tpu.memory_space<vmem>>, %arg2: memref<16x16xf32, #tpu.memory_space<vmem>>) attributes {dimension_semantics = [], scalar_prefetch = 0 : i64, scratch_operands = 0 : i64, tpu.core_type = #tpu.core_type<tc>} {
    %c0 = arith.constant 0 : index
    %c0_0 = arith.constant 0 : index
    %c0_1 = arith.constant 0 : index
    %0 = vector.load %arg0[%c0, %c0_0, %c0_1] : memref<2x16x128xf32, #tpu.memory_space<vmem>>, vector<2x16x128xf32>
    %c0_2 = arith.constant 0 : index
    %c0_3 = arith.constant 0 : index
    %1 = vector.load %arg1[%c0_2, %c0_3] : memref<128x128xf32, #tpu.memory_space<vmem>>, vector<128x128xf32>
    %2 = vector.shape_cast %0 : vector<2x16x128xf32> to vector<32x128xf32>
    %cst = arith.constant dense<0.000000e+00> : vector<32x128xf32>
    %3 = tpu.matmul %2, %1, %cst {dimension_numbers = #tpu.dot_dimension_numbers<[1], [0], [0], [1], [0, 0, 1, 1], [], []>} : vector<32x128xf32>, vector<128x128xf32>, vector<32x128xf32> -> vector<32x128xf32>
    %4 = vector.shape_cast %3 : vector<32x128xf32> to vector<2x16x128xf32>
    "tpu.trace_start"() <{level = 10 : i32, message = "bnf,bmf->bnm"}> : () -> ()
    %cst_4 = arith.constant dense<0.000000e+00> : vector<2x16x16xf32>
    %5 = tpu.matmul %4, %0, %cst_4 {dimension_numbers = #tpu.dot_dimension_numbers<[2], [2], [1], [1], [0, 0, 0, 1, 1, 1], [0], [0]>} : vector<2x16x128xf32>, vector<2x16x128xf32>, vector<2x16x16xf32> -> vector<2x16x16xf32>
    %cst_5 = arith.constant 0.000000e+00 : f32
    "tpu.trace_stop"() : () -> ()
    %6 = vector.broadcast %cst_5 : f32 to vector<2x16x16xf32>
    %7 = arith.cmpf oge, %5, %6 : vector<2x16x16xf32>
    %cst_6 = arith.constant 2.000000e-01 : f32
    %8 = vector.broadcast %cst_6 : f32 to vector<2x16x16xf32>
    %9 = arith.mulf %8, %5 : vector<2x16x16xf32>
    %10 = arith.select %7, %5, %9 : vector<2x16x16xi1>, vector<2x16x16xf32>
    %cst_7 = arith.constant dense<0xFF800000> : vector<2x16xf32>
    %11 = vector.multi_reduction <maximumf>, %10, %cst_7 [2] : vector<2x16x16xf32> to vector<2x16xf32>
    %12 = vector.shape_cast %11 : vector<2x16xf32> to vector<2x16x1xf32>
    %13 = vector.broadcast %12 : vector<2x16x1xf32> to vector<2x16x16xf32>
    %14 = arith.subf %10, %13 : vector<2x16x16xf32>
    %15 = math.exp %14 : vector<2x16x16xf32>
    %cst_8 = arith.constant dense<0.000000e+00> : vector<2x16xf32>
    %16 = vector.multi_reduction <add>, %15, %cst_8 [2] : vector<2x16x16xf32> to vector<2x16xf32>
    %17 = vector.shape_cast %16 : vector<2x16xf32> to vector<2x16x1xf32>
    %18 = tpu.reciprocal %17 {approx = true} : vector<2x16x1xf32> -> vector<2x16x1xf32>
    %19 = vector.broadcast %18 : vector<2x16x1xf32> to vector<2x16x16xf32>
    %20 = arith.mulf %15, %19 : vector<2x16x16xf32>
    %cst_9 = arith.constant dense<0.000000e+00> : vector<16x16xf32>
    %21 = vector.multi_reduction <add>, %20, %cst_9 [0] : vector<2x16x16xf32> to vector<16x16xf32>
    %cst_10 = arith.constant 2.000000e+00 : f32
    %22 = vector.broadcast %cst_10 : f32 to vector<16x16xf32>
    %23 = arith.divf %21, %22 : vector<16x16xf32>
    %24 = tpu.transpose %23, [1, 0] : vector<16x16xf32> -> vector<16x16xf32>
    %25 = arith.addf %23, %24 : vector<16x16xf32>
    %cst_11 = arith.constant 5.000000e-01 : f32
    %26 = vector.broadcast %cst_11 : f32 to vector<16x16xf32>
    %27 = arith.mulf %26, %25 : vector<16x16xf32>
    %c0_12 = arith.constant 0 : index
    %c0_13 = arith.constant 0 : index
    %28 = vector.load %arg2[%c0_12, %c0_13] : memref<16x16xf32, #tpu.memory_space<vmem>>, vector<16x16xf32>
    tpu.vector_store %arg2[%c0_12, %c0_13], %27 {strides = array<i32>} : memref<16x16xf32, #tpu.memory_space<vmem>>, vector<16x16xf32>,
    return
  }
}

</mosaic_0001>

<bundles_post_ra>
// kernel: my_graph_convolution_forward.2
= control target key start
LH: loop header
LB: loop body
LE: loop exit
PB: predicated region body
PF: predicated region fallthrough
CT: control target
= control target key end

     0   :  { %7 = vsyncpa [#allocation3], 0  ;;  %s710_s0 = inlined_call_operand.hbm [shape: f32[2,16,128], index: 0, kind: input, shape index: {}]   ;;  %s711_s1 = inlined_call_operand.hbm [shape: f32[128,128], index: 1, kind: input, shape index: {}]   ;;  %s712_s2 = inlined_call_operand.hbm [shape: f32[16,16], index: 2, kind: output, shape index: {}]  }
   0x1   :  { %8 = vsyncpa [#allocation6], 0 }
   0x2   :  { %9 = vsyncpa [#allocation4], 0  ;;  %s631_s9 = smov [#allocation2]   ;;  %s559_s13 = scalar_lea.hbm %s710_s0, 512 }
   0x3   :  { %s15_s10 = sshll.u32 %s631_s9, 4  ;;  %p560_p0 = scmp.ne.s32.totalorder %s710_s0, %s559_s13  ;;  %s16_s10 = int_to_ptr.vmem [resolvable:$true] %s15_s10 }
   0x4   :  { %p563_p1 = scmp.lt.u32.totalorder %s559_s13, %s710_s0 }
   0x6   :  { %p565_p2 = pnand %p563_p1, %p560_p0 }
   0x8   :  { %568 = shalt.err (!%p565_p2)
}
   0x9   :  { %s569_s18 = scalar_lea.vmem %s16_s10, 512  ;;  %p574_p4 = scmp.lt.s32.totalorder %s16_s10, %s16_s10 }
   0xa   :  { %p570_p3 = scmp.ne.s32.totalorder %s16_s10, %s569_s18  ;;  %p575_p5 = scmp.lt.s32.totalorder %s569_s18, %s569_s18 }
   0xc   :  { %p576_p6 = por %p575_p5, %p574_p4 }
   0xe   :  { %p577_p7 = pnand %p576_p6, %p570_p3 }
  0x10   :  { %580 = shalt.err (!%p577_p7)
}
  0x11   :  { %s632_s19 = smov 128   ;;  %s633_s20 = smov 8  }
  0x12   :  { %21 = dma.hbm_to_vmem [thread:$0]  %s710_s0, 512, %s16_s10, [#allocation3], %s632_s19, %s632_s19, %s633_s20  }
  0x13   :  { %s634_s23 = smov [#allocation5]   ;;  %s581_s27 = scalar_lea.hbm %s711_s1, 2048 }
  0x14   :  { %s27_s24 = sshll.u32 %s634_s23, 4  ;;  %p582_p8 = scmp.ne.s32.totalorder %s711_s1, %s581_s27  ;;  %s28_s24 = int_to_ptr.vmem [resolvable:$true] %s27_s24 }
  0x15   :  { %p585_p9 = scmp.lt.u32.totalorder %s581_s27, %s711_s1 }
  0x17   :  { %p587_p10 = pnand %p585_p9, %p582_p8 }
  0x19   :  { %590 = shalt.err (!%p587_p10)
}
  0x1a   :  { %s591_s4 = scalar_lea.vmem %s28_s24, 2048  ;;  %p596_p12 = scmp.lt.s32.totalorder %s28_s24, %s28_s24 }
  0x1b   :  { %p592_p11 = scmp.ne.s32.totalorder %s28_s24, %s591_s4  ;;  %p597_p13 = scmp.lt.s32.totalorder %s591_s4, %s591_s4 }
  0x1d   :  { %p598_p0 = por %p597_p13, %p596_p12 }
  0x1f   :  { %p599_p1 = pnand %p598_p0, %p592_p11 }
  0x21   :  { %602 = shalt.err (!%p599_p1)
}
  0x22   :  { %33 = dma.hbm_to_vmem [thread:$0]  %s711_s1, 2048, %s28_s24, [#allocation6], %s632_s19, %s632_s19, %s633_s20  }
  0x23   :  { %625 = dma.done.wait [#allocation3], 512  }
  0x24   :  { %626 = vsyncadd [#allocation3], 4294966784 }
  0x25   :  { %627 = dma.done.wait [#allocation6], 2048  }
  0x26   :  { %628 = vsyncadd [#allocation6], 4294965248  ;;  %v44_v0 = vld [vmem:[#allocation5] sm:$0xff]  ;;  %v45_v1 = vld [vmem:[#allocation5 + $0x8] sm:$0xff]  ;;  %vm307_vm1 = vcmask 130048   ;;  %s635_s1 = smov [#allocation7]  }
  0x27   :  { %v46_v2 = vld [vmem:[#allocation5 + $0x10] sm:$0xff]  ;;  %v497_v3 = vpack.c.bf16 %v45_v1, %v44_v0  ;;  %v47_v4 = vld [vmem:[#allocation5 + $0x18] sm:$0xff]  ;;  %v48_v6 = vld [vmem:[#allocation5 + $0x20] sm:$0xff]  ;;  %s404_s6 = sshll.u32 %s635_s1, 4  ;;  %s405_s6 = int_to_ptr.vmem [resolvable:$true] %s404_s6 }
  0x28   :  { %v501_v5 = vpack.c.bf16 %v47_v4, %v46_v2  ;;  %v49_v7 = vld [vmem:[#allocation5 + $0x28] sm:$0xff]  ;;  %v50_v9 = vld [vmem:[#allocation5 + $0x30] sm:$0xff]  ;;  %v40_v10 = vld [vmem:[#allocation2] sm:$0xff]  ;;  %s603_s7 = scalar_lea.vmem %s405_s6, 256  ;;  %p608_p3 = scmp.lt.s32.totalorder %s405_s6, %s405_s6 }
  0x29   :  { %498 = vmatprep.subr.bf16.mxu0 %v497_v3  ;;  %v505_v8 = vpack.c.bf16 %v49_v7, %v48_v6  ;;  %v41_v11 = vld [vmem:[#allocation2 + $0x8] sm:$0xff]  ;;  %v51_v12 = vld [vmem:[#allocation5 + $0x38] sm:$0xff]  ;;  %477 = vmatprep.mubr.f32.mxu0 %v40_v10  ;;  %v42_v13 = vld [vmem:[#allocation2 + $0x10] sm:$0xff]  ;;  %p604_p2 = scmp.ne.s32.totalorder %s405_s6, %s603_s7  ;;  %p609_p4 = scmp.lt.s32.totalorder %s603_s7, %s603_s7 }
  0x2a   :  { %500 = vmatpush3.bf16.msra.mxu0 %v497_v3  ;;  %v43_v14 = vld [vmem:[#allocation2 + $0x18] sm:$0xff]  ;;  %v529_v15 = vpack.c.bf16 %v41_v11, %v40_v10  ;;  %v509_v17 = vpack.c.bf16 %v51_v12, %v50_v9  ;;  %v52_v18 = vld [vmem:[#allocation5 + $0x40] sm:$0xff]  ;;  %v53_v19 = vld [vmem:[#allocation5 + $0x48] sm:$0xff] }
  0x2b   :  { %502 = vmatprep.subr.bf16.mxu0 %v501_v5  ;;  %v533_v16 = vpack.c.bf16 %v43_v14, %v42_v13  ;;  %v513_v20 = vpack.c.bf16 %v53_v19, %v52_v18  ;;  %v54_v21 = vld [vmem:[#allocation5 + $0x50] sm:$0xff]  ;;  %v55_v22 = vld [vmem:[#allocation5 + $0x58] sm:$0xff]  ;;  %v56_v24 = vld [vmem:[#allocation5 + $0x60] sm:$0xff]  ;;  %p610_p5 = por %p609_p4, %p608_p3 }
  0x2c   :  { %530 = vmatprep.subr.bf16.mxu1 %v529_v15  ;;  %v517_v23 = vpack.c.bf16 %v55_v22, %v54_v21  ;;  %v57_v25 = vld [vmem:[#allocation5 + $0x68] sm:$0xff]  ;;  %v58_v27 = vld [vmem:[#allocation5 + $0x70] sm:$0xff]  ;;  %v59_v28 = vld [vmem:[#allocation5 + $0x78] sm:$0xff] }
  0x2d   :  { %532 = vmatpush3.bf16.xpose.msra.mxu1 %v529_v15  ;;  %v521_v26 = vpack.c.bf16 %v57_v25, %v56_v24  ;;  %v525_v29 = vpack.c.bf16 %v59_v28, %v58_v27  ;;  %p611_p6 = pnand %p610_p5, %p604_p2 }
  0x2e   :  { %504 = vmatpush3.bf16.msra.mxu0 %v501_v5  ;;  %534 = vmatprep.subr.bf16.mxu1 %v533_v16 }
  0x2f   :  { %506 = vmatprep.subr.bf16.mxu0 %v505_v8 }
  0x32   :  { %508 = vmatpush3.bf16.msra.mxu0 %v505_v8 }
  0x33   :  { %510 = vmatprep.subr.bf16.mxu0 %v509_v17 }
  0x36   :  { %512 = vmatpush3.bf16.msra.mxu0 %v509_v17 }
  0x37   :  { %514 = vmatprep.subr.bf16.mxu0 %v513_v20 }
  0x3a   :  { %516 = vmatpush3.bf16.msra.mxu0 %v513_v20 }
  0x3b   :  { %518 = vmatprep.subr.bf16.mxu0 %v517_v23 }
  0x3e   :  { %520 = vmatpush3.bf16.msra.mxu0 %v517_v23 }
  0x3f   :  { %522 = vmatprep.subr.bf16.mxu0 %v521_v26 }
  0x42   :  { %524 = vmatpush3.bf16.msra.mxu0 %v521_v26 }
  0x43   :  { %526 = vmatprep.subr.bf16.mxu0 %v525_v29 }
  0x46   :  { %528 = vmatpush3.bf16.msra.mxu0 %v525_v29 }
  0x49   :  { %478 = vmatmul.mubr.f32.vlgmr.msra.gmra.mrb[0].mxu0 %v41_v11 }
  0x4a   :  { %480 = vmatprep.mubr.f32.mxu0 %v42_v13 }
  0x4d   :  { %481 = vmatmul.mubr.f32.gmra.mrb[2].mxu0 %v43_v14 }
 0x11c   :  { %v479_v30 = vpop.f32.mrb[0].mxu0 }
 0x11d   :  { %v126_v31 = vpop.f32.mrb[1].mxu0 }
 0x11e   :  { %487 = vmatprep.mubr.f32.mxu1 %v126_v31 }
 0x11f   :  { %488 = vmatmul.mubr.f32.vlgmr.msra.gmra.mrb[0].mxu1 %v479_v30 }
 0x120   :  { %536 = vmatpush3.bf16.xpose.msra.mxu1 %v533_v16  ;;  %v482_v32 = vpop.f32.mrb[2].mxu0 }
 0x121   :  { %v136_v33 = vpop.f32.mrb[3].mxu0 }
 0x122   :  { %494 = vmatprep.mubr.f32.mxu1 %v136_v33 }
 0x127   :  { %495 = vmatmul.mubr.f32.vlgmr.msra.gmra.mrb[2].mxu1 %v482_v32 }
 0x1f2   :  { %v489_v34 = vpop.f32.mrb[0].mxu1 }
 0x1f3   :  { %v300_v35 = vmul.f32 0.2, %v489_v34  ;;  %v211_v36 = vpop.f32.mrb[1].mxu1  ;;  %vm296_vm0 = vcmp.ge.f32.partialorder %v489_v34, 0.0 }
 0x1f4   :  { %v299_v37 = vmul.f32 0.2, %v211_v36  ;;  %vm295_vm2 = vcmp.ge.f32.partialorder %v211_v36, 0.0 }
 0x1f5   :  { %v304_v38 = vsel %vm296_vm0, %v489_v34, %v300_v35 }
 0x1f6   :  { %v311_v39 = vsel %vm307_vm1, %v304_v38, -inf  ;;  %v303_v40 = vsel %vm295_vm2, %v211_v36, %v299_v37 }
 0x1f7   :  { %312 = vmax.xlane.f32.xlu1 %v311_v39  ;;  %v308_v41 = vsel %vm307_vm1, %v303_v40, -inf }
 0x1f8   :  { %309 = vmax.xlane.f32.xlu0 %v308_v41 }
 0x1fa   :  { %v496_v42 = vpop.f32.mrb[2].mxu1 }
 0x1fb   :  { %vm298_vm3 = vcmp.ge.f32.partialorder %v496_v42, 0.0  ;;  %v302_v43 = vmul.f32 0.2, %v496_v42  ;;  %v286_v44 = vpop.f32.mrb[3].mxu1 }
 0x1fc   :  { %vm297_vm4 = vcmp.ge.f32.partialorder %v286_v44, 0.0  ;;  %v301_v45 = vmul.f32 0.2, %v286_v44 }
 0x1fd   :  { %v306_v46 = vsel %vm298_vm3, %v496_v42, %v302_v43 }
 0x1fe   :  { %v317_v47 = vsel %vm307_vm1, %v306_v46, -inf  ;;  %v305_v48 = vsel %vm297_vm4, %v286_v44, %v301_v45 }
 0x1ff   :  { %318 = vmax.xlane.f32.xlu1 %v317_v47  ;;  %v314_v49 = vsel %vm307_vm1, %v305_v48, -inf }
 0x200   :  { %315 = vmax.xlane.f32.xlu0 %v314_v49 }
 0x284   :  { %v313_v50 = vpop.xlane.xlu1 %312 }
 0x285   :  { %v321_v51 = vsub.f32 %v304_v38, %v313_v50  ;;  %v310_v52 = vpop.xlane.xlu0 %309 }
 0x286   :  { %v320_v53 = vsub.f32 %v303_v40, %v310_v52 }
 0x287   :  { %v326_v54 = vmul.f32 1.442695, %v321_v51 }
 0x288   :  { %v324_v55 = vmul.f32 1.442695, %v320_v53 }
 0x28a   :  { %543 = vpow2.f32 %v324_v55 }
 0x28b   :  { %545 = vpow2.f32 %v326_v54 }
 0x28c   :  { %v319_v56 = vpop.xlane.xlu1 %318 }
 0x28d   :  { %v323_v57 = vsub.f32 %v306_v46, %v319_v56  ;;  %v316_v58 = vpop.xlane.xlu0 %315 }
 0x28e   :  { %v322_v59 = vsub.f32 %v305_v48, %v316_v58 }
 0x28f   :  { %v330_v60 = vmul.f32 1.442695, %v323_v57 }
 0x290   :  { %v328_v61 = vmul.f32 1.442695, %v322_v59 }
 0x292   :  { %547 = vpow2.f32 %v328_v61 }
 0x293   :  { %549 = vpow2.f32 %v330_v60 }
 0x294   :  { %v544_v62 = vpop.eup %543 }
 0x295   :  { %v332_v63 = vsel %vm307_vm1, %v544_v62, 0.0  ;;  %v546_v0 = vpop.eup %545 }
 0x296   :  { %333 = vadd.xlane.f32.xlu0 %v332_v63  ;;  %v335_v1 = vsel %vm307_vm1, %v546_v0, 0.0 }
 0x29a   :  { %336 = vadd.xlane.f32.xlu0 %v335_v1 }
 0x29c   :  { %v548_v2 = vpop.eup %547 }
 0x29d   :  { %v338_v3 = vsel %vm307_vm1, %v548_v2, 0.0  ;;  %v550_v4 = vpop.eup %549 }
 0x29e   :  { %339 = vadd.xlane.f32.xlu1 %v338_v3  ;;  %v341_v5 = vsel %vm307_vm1, %v550_v4, 0.0 }
 0x2a2   :  { %342 = vadd.xlane.f32.xlu1 %v341_v5 }
 0x323   :  { %v334_v6 = vpop.xlane.xlu0 %333 }
 0x324   :  { %551 = vrcp.f32 %v334_v6 }
 0x327   :  { %v337_v7 = vpop.xlane.xlu0 %336 }
 0x328   :  { %553 = vrcp.f32 %v337_v7 }
 0x32b   :  { %v340_v8 = vpop.xlane.xlu1 %339 }
 0x32c   :  { %555 = vrcp.f32 %v340_v8 }
 0x32e   :  { %v552_v10 = vpop.eup %551 }
 0x32f   :  { %v343_v9 = vpop.xlane.xlu1 %342  ;;  %v348_v12 = vmul.f32 %v552_v10, %v544_v62 }
 0x330   :  { %557 = vrcp.f32 %v343_v9 }
 0x331   :  { %v352_v15 = vsel %vm307_vm1, %v348_v12, 0.0 }
 0x332   :  { %v554_v11 = vpop.eup %553 }
 0x333   :  { %v349_v17 = vmul.f32 %v554_v11, %v546_v0 }
 0x335   :  { %v355_v22 = vsel %vm307_vm1, %v349_v17, 0.0 }
 0x336   :  { %v556_v13 = vpop.eup %555 }
 0x337   :  { %v350_v14 = vmul.f32 %v556_v13, %v548_v2 }
 0x339   :  { %v353_v16 = vsel %vm307_vm1, %v350_v14, 0.0 }
 0x33a   :  { %v558_v18 = vpop.eup %557  ;;  %v354_v19 = vadd.f32 %v353_v16, %v352_v15 }
 0x33b   :  { %v351_v20 = vmul.f32 %v558_v18, %v550_v4 }
 0x33c   :  { %v359_v21 = vmul.f32 0.5, %v354_v19 }
 0x33d   :  { %v356_v23 = vsel %vm307_vm1, %v351_v20, 0.0 }
 0x33e   :  { %361 = vxpose.xlu0.b32.start [1/2] (short) (narrow) %v359_v21, 16  ;;  %v357_v24 = vadd.f32 %v356_v23, %v355_v22 }
 0x340   :  { %v360_v25 = vmul.f32 0.5, %v357_v24 }
 0x342   :  { %362 = vxpose.xlu0.b32.end [2/2] (short) (narrow) %v360_v25, 16 }
 0x3be   :  { %v377_v26 = vpop.trf.xlu0 }
 0x3bf   :  { %v393_v27 = vadd.f32 %v377_v26, %v359_v21 }
 0x3c1   :  { %v395_v28 = vmul.f32 0.5, %v393_v27 }
 0x3c2   :  { %v378_v29 = vpop.trf.xlu0 }
 0x3c3   :  { %397 = vst.msk [vmem:[#allocation7] sm:$0xff] %vm307_vm1, %v395_v28  ;;  %v394_v30 = vadd.f32 %v378_v29, %v360_v25 }
 0x3c5   :  { %v396_v31 = vmul.f32 0.5, %v394_v30 }
 0x3c7   :  { %398 = vst.msk [vmem:[#allocation7 + $0x8] sm:$0xff] %vm307_vm1, %v396_v31 }
 0x3c8   :  { %614 = shalt.err (!%p611_p6)
}
 0x3c9   :  { %s615_s10 = scalar_lea.hbm %s712_s2, 256 }
 0x3ca   :  { %p616_p7 = scmp.ne.s32.totalorder %s712_s2, %s615_s10  ;;  %p619_p8 = scmp.lt.u32.totalorder %s615_s10, %s712_s2 }
 0x3cc   :  { %p621_p9 = pnand %p619_p8, %p616_p7 }
 0x3ce   :  { %624 = shalt.err (!%p621_p9)
}
 0x3cf   :  { %410 = dma.vmem_to_hbm [thread:$0]  %s405_s6, 256, %s712_s2, [#allocation4], %s632_s19, %s632_s19, %s633_s20  }
 0x3d0   :  { %629 = dma.done.wait [#allocation4], 256  }
 0x3d1   :  { %630 = vsyncadd [#allocation4], 4294967040 }
 0x3d2   :  { %414 = vsyncpa [#allocation3], 1 }
 0x3d3   :  { %415 = vsyncpa [#allocation6], 1 }
 0x3d4   :  { %416 = vsyncpa [#allocation4], 1 }

// kernel: my_graph_convolution_forward.3
= control target key start
LH: loop header
LB: loop body
LE: loop exit
PB: predicated region body
PF: predicated region fallthrough
CT: control target
= control target key end

     0   :  { %8 = vsyncpa [#allocation3], 0  ;;  %s1212_s12 = smov [#allocation2]   ;;  %s1399_s0 = inlined_call_operand.hbm [shape: f32[16,16], index: 0, kind: input, shape index: {}]   ;;  %s1400_s1 = inlined_call_operand.vmem [shape: f32[5,16], index: 1, kind: input, shape index: {}]   ;;  %s1401_s2 = inlined_call_operand.vmem [shape: f32[2,16,128], index: 2, kind: input, shape index: {}]   ;;  %s1402_s3 = inlined_call_operand.vmem [shape: f32[80,2], index: 3, kind: output, shape index: {}]  }
   0x1   :  { %s14_s13 = sshll.u32 %s1212_s12, 4  ;;  %s1188_s16 = scalar_lea.hbm %s1399_s0, 256  ;;  %s15_s13 = int_to_ptr.vmem [resolvable:$true] %s14_s13 }
   0x2   :  { %p1189_p0 = scmp.ne.s32.totalorder %s1399_s0, %s1188_s16  ;;  %p1192_p1 = scmp.lt.u32.totalorder %s1188_s16, %s1399_s0 }
   0x4   :  { %p1194_p2 = pnand %p1192_p1, %p1189_p0 }
   0x6   :  { %1197 = shalt.err (!%p1194_p2)
}
   0x7   :  { %s1198_s21 = scalar_lea.vmem %s15_s13, 256  ;;  %p1203_p4 = scmp.lt.s32.totalorder %s15_s13, %s15_s13 }
   0x8   :  { %p1199_p3 = scmp.ne.s32.totalorder %s15_s13, %s1198_s21  ;;  %p1204_p5 = scmp.lt.s32.totalorder %s1198_s21, %s1198_s21 }
   0xa   :  { %p1205_p6 = por %p1204_p5, %p1203_p4 }
   0xc   :  { %p1206_p7 = pnand %p1205_p6, %p1199_p3 }
   0xe   :  { %1209 = shalt.err (!%p1206_p7)
}
   0xf   :  { %s1213_s22 = smov 128   ;;  %s1214_s23 = smov 8  }
  0x10   :  { %20 = dma.hbm_to_vmem [thread:$0]  %s1399_s0, 256, %s15_s13, [#allocation3], %s1213_s22, %s1213_s22, %s1214_s23  }
  0x11   :  { %1210 = dma.done.wait [#allocation3], 256  }
  0x12   :  { %1211 = vsyncadd [#allocation3], 4294967040  ;;  %v36_v0 = vlaneseq  ;;  %v1215_v1 = vmov 1966171168   ;;  %vm106_vm0 = vcmask 130048   ;;  %v28_v7 = vld [vmem:[#allocation2] sm:$0xff] }
  0x13   :  { %v34_v2 = vunpack.c.l.s4 %v1215_v1  ;;  %vm1252_vm1 = vmpackc.low %vm106_vm0, %vm106_vm0  ;;  %v29_v8 = vld [vmem:[#allocation2 + $0x8] sm:$0xff]  ;;  %v30_v9 = vld [vmem:[%s1400_s1] sm:$0x1f]  ;;  %v1216_v42 = vmov 1.0|1.0   ;;  %vm540_vm2 = vcmask 7168  }
  0x14   :  { %v37_v3 = vshrl.u32 %v36_v0, 7  ;;  %v1133_v10 = vpack.c.bf16 %v29_v8, %v28_v7  ;;  %v32_v11 = vcombine.high %v30_v9, %v30_v9  ;;  %v882_v14 = vld [vmem:[%s1401_s2 + $0x10] sm:$0xff]  ;;  %v883_v15 = vld [vmem:[%s1401_s2 + $0x18] sm:$0xff]  ;;  %v258_v16 = vld [vmem:[%s1401_s2] sm:$0xff]  ;;  %s1217_s8 = smov 1   ;;  %vm844_vm3 = vcmask 15368  }
  0x15   :  { %v35_v4 = vunpack.c.0.s8 %v34_v2  ;;  %v1159_v17 = vpack.c.bf16 %v883_v15, %v882_v14  ;;  %v259_v18 = vld [vmem:[%s1401_s2 + $0x8] sm:$0xff] }
  0x16   :  { %v73_v13 = vsub.s32 0, %v37_v3  ;;  %1135 = vmatprep.subr.msk.bf16.mxu0 %vm1252_vm1, %v1133_v10  ;;  %1179 = vmatprep.subr.msk.bf16.mxu1 %vm1252_vm1, %v1133_v10  ;;  %v1139_v22 = vpack.c.bf16 %v259_v18, %v258_v16 }
  0x17   :  { %v38_v5 = vsub.s32 %v35_v4, %v37_v3  ;;  %1138 = vmatpush3.bf16.xpose.msk.msra.mxu0 %vm1252_vm1, %v1133_v10  ;;  %1180 = vmatpush3.bf16.xpose.msk.msra.mxu1 %vm1252_vm1, %v1133_v10 }
  0x18   :  { %1160 = vmatprep.subr.bf16.mxu0 %v1159_v17  ;;  %1140 = vmatprep.subr.bf16.mxu1 %v1139_v22 }
  0x19   :  { %v39_v12 = vrot.slane %v30_v9, %v38_v5  ;;  %v46_v19 = vrot.slane %v32_v11, %v38_v5 }
  0x1b   :  { %v47_v20 = vcombine.high %v39_v12, %v39_v12  ;;  %v54_v21 = vrot.slane %v39_v12, %v38_v5  ;;  %v61_v26 = vrot.slane %v46_v19, %v38_v5 }
  0x1d   :  { %v69_v23 = vcombine.high %v54_v21, %v54_v21  ;;  %v74_v24 = vrot.slane %v54_v21, %v73_v13  ;;  %v68_v25 = vrot.slane %v47_v20, %v38_v5  ;;  %v90_v32 = vrot.slane %v61_v26, %v73_v13 }
  0x1f   :  { %v96_v27 = vmul.f32 %v74_v24, %v28_v7  ;;  %v97_v28 = vmul.f32 %v74_v24, %v29_v8  ;;  %v78_v29 = vrot.slane %v68_v25, %v73_v13  ;;  %v82_v30 = vrot.slane %v69_v23, %v73_v13 }
  0x20   :  { %v70_v31 = vcombine.high %v68_v25, %v68_v25  ;;  %v104_v39 = vmul.f32 %v90_v32, %v28_v7  ;;  %v105_v41 = vmul.f32 %v90_v32, %v29_v8 }
  0x21   :  { %986 = vmatprep.mubr.msk.f32.mxu0 %vm106_vm0, %v96_v27  ;;  %v98_v33 = vmul.f32 %v78_v29, %v28_v7  ;;  %v99_v35 = vmul.f32 %v78_v29, %v29_v8  ;;  %v100_v36 = vmul.f32 %v82_v30, %v28_v7  ;;  %v101_v40 = vmul.f32 %v82_v30, %v29_v8 }
  0x22   :  { %v86_v34 = vrot.slane %v70_v31, %v73_v13  ;;  %987 = vmatmul.mubr.msk.f32.vlgmr.msra.gmra.mrb[0].mxu0 %vm106_vm0, %v97_v28 }
  0x23   :  { %989 = vmatprep.mubr.msk.f32.mxu0 %vm106_vm0, %v98_v33  ;;  %1162 = vmatpush3.bf16.msra.mxu0 %v1159_v17 }
  0x24   :  { %v102_v37 = vmul.f32 %v86_v34, %v28_v7  ;;  %v103_v38 = vmul.f32 %v86_v34, %v29_v8  ;;  %1163 = vmatprep.subr.bf16.mxu0 %v1216_v42 }
  0x26   :  { %995 = vmatprep.mubr.msk.f32.mxu1 %vm106_vm0, %v102_v37  ;;  %990 = vmatmul.mubr.msk.f32.gmra.mrb[2].mxu0 %vm106_vm0, %v99_v35 }
  0x27   :  { %996 = vmatmul.mubr.msk.f32.vlgmr.msra.gmra.mrb[0].mxu1 %vm106_vm0, %v103_v38  ;;  %992 = vmatprep.mubr.msk.f32.mxu0 %vm106_vm0, %v100_v36 }
  0x28   :  { %998 = vmatprep.mubr.msk.f32.mxu1 %vm106_vm0, %v104_v39  ;;  %1142 = vmatpush3.bf16.msra.mxu1 %v1139_v22 }
  0x29   :  { %1143 = vmatprep.subr.bf16.mxu1 %v1216_v42 }
  0x2a   :  { %993 = vmatmul.mubr.msk.f32.gmra.mrb[4].mxu0 %vm106_vm0, %v101_v40 }
  0x2b   :  { %999 = vmatmul.mubr.msk.f32.gmra.mrb[2].mxu1 %vm106_vm0, %v105_v41 }
  0xf5   :  { %v988_v43 = vpop.f32.mrb[0].mxu0 }
  0xf6   :  { %v209_v44 = vpop.f32.mrb[1].mxu0 }
  0xf7   :  { %1005 = vmatprep.mubr.msk.f32.mxu1 %vm106_vm0, %v209_v44  ;;  %1071 = vmatprep.mubr.msk.f32.mxu0 %vm106_vm0, %v209_v44 }
  0xf8   :  { %1006 = vmatmul.mubr.msk.f32.vlgmr.msra.gmra.mrb[4].mxu1 %vm106_vm0, %v988_v43  ;;  %1072 = vmatmul.mubr.msk.f32.vlgmr.msra.gmra.mrb[6].mxu0 %vm106_vm0, %v988_v43 }
  0xf9   :  { %v991_v45 = vpop.f32.mrb[2].mxu0  ;;  %1144 = vmatpush3.bf16.msra.mxu1 %v1216_v42  ;;  %1164 = vmatpush3.bf16.msra.mxu0 %v1216_v42 }
  0xfa   :  { %v997_v46 = vpop.f32.mrb[0].mxu1  ;;  %v219_v47 = vpop.f32.mrb[3].mxu0  ;;  %1145 = vmatprep.subr.bf16.mxu1 %v1216_v42  ;;  %1165 = vmatprep.subr.bf16.mxu0 %v1216_v42 }
  0xfb   :  { %v239_v48 = vpop.f32.mrb[1].mxu1  ;;  %1008 = vmatprep.mubr.msk.f32.mxu1 %vm106_vm0, %v219_v47  ;;  %1074 = vmatprep.mubr.msk.f32.mxu0 %vm106_vm0, %v219_v47 }
  0xfc   :  { %1009 = vmatmul.mubr.msk.f32.gmra.mrb[6].mxu1 %vm106_vm0, %v991_v45  ;;  %1075 = vmatmul.mubr.msk.f32.gmra.mrb[8].mxu0 %vm106_vm0, %v991_v45 }
  0xfd   :  { %v994_v49 = vpop.f32.mrb[4].mxu0  ;;  %1146 = vmatpush3.bf16.msra.mxu1 %v1216_v42  ;;  %1166 = vmatpush3.bf16.msra.mxu0 %v1216_v42 }
  0xfe   :  { %v1000_v50 = vpop.f32.mrb[2].mxu1  ;;  %v229_v51 = vpop.f32.mrb[5].mxu0  ;;  %1147 = vmatprep.subr.bf16.mxu1 %v1216_v42  ;;  %1167 = vmatprep.subr.bf16.mxu0 %v1216_v42 }
  0xff   :  { %v249_v52 = vpop.f32.mrb[3].mxu1  ;;  %1011 = vmatprep.mubr.msk.f32.mxu1 %vm106_vm0, %v229_v51  ;;  %1077 = vmatprep.mubr.msk.f32.mxu0 %vm106_vm0, %v229_v51 }
 0x100   :  { %1012 = vmatmul.mubr.msk.f32.gmra.mrb[8].mxu1 %vm106_vm0, %v994_v49  ;;  %1078 = vmatmul.mubr.msk.f32.gmra.mrb[10].mxu0 %vm106_vm0, %v994_v49 }
 0x101   :  { %1014 = vmatprep.mubr.msk.f32.mxu1 %vm106_vm0, %v239_v48  ;;  %1080 = vmatprep.mubr.msk.f32.mxu0 %vm106_vm0, %v239_v48 }
 0x102   :  { %1148 = vmatpush3.bf16.msra.mxu1 %v1216_v42  ;;  %1168 = vmatpush3.bf16.msra.mxu0 %v1216_v42 }
 0x103   :  { %1149 = vmatprep.subr.bf16.mxu1 %v1216_v42  ;;  %1169 = vmatprep.subr.bf16.mxu0 %v1216_v42 }
 0x104   :  { %1015 = vmatmul.mubr.msk.f32.gmra.mrb[10].mxu1 %vm106_vm0, %v997_v46  ;;  %1081 = vmatmul.mubr.msk.f32.gmra.mrb[12].mxu0 %vm106_vm0, %v997_v46 }
 0x105   :  { %1017 = vmatprep.mubr.msk.f32.mxu1 %vm106_vm0, %v249_v52  ;;  %1083 = vmatprep.mubr.msk.f32.mxu0 %vm106_vm0, %v249_v52 }
 0x106   :  { %1150 = vmatpush3.bf16.msra.mxu1 %v1216_v42  ;;  %1170 = vmatpush3.bf16.msra.mxu0 %v1216_v42 }
 0x107   :  { %1151 = vmatprep.subr.bf16.mxu1 %v1216_v42  ;;  %1171 = vmatprep.subr.bf16.mxu0 %v1216_v42 }
 0x108   :  { %1018 = vmatmul.mubr.msk.f32.gmra.mrb[12].mxu1 %vm106_vm0, %v1000_v50  ;;  %1084 = vmatmul.mubr.msk.f32.gmra.mrb[14].mxu0 %vm106_vm0, %v1000_v50 }
 0x10a   :  { %1152 = vmatpush3.bf16.msra.mxu1 %v1216_v42  ;;  %1172 = vmatpush3.bf16.msra.mxu0 %v1216_v42 }
 0x10b   :  { %1153 = vmatprep.subr.bf16.mxu1 %v1216_v42  ;;  %1173 = vmatprep.subr.bf16.mxu0 %v1216_v42 }
 0x10e   :  { %1154 = vmatpush3.bf16.msra.mxu1 %v1216_v42  ;;  %1174 = vmatpush3.bf16.msra.mxu0 %v1216_v42 }
 0x10f   :  { %1155 = vmatprep.subr.bf16.mxu1 %v1216_v42  ;;  %1175 = vmatprep.subr.bf16.mxu0 %v1216_v42 }
 0x112   :  { %1156 = vmatpush3.bf16.msra.mxu1 %v1216_v42  ;;  %1176 = vmatpush3.bf16.msra.mxu0 %v1216_v42 }
 0x113   :  { %1157 = vmatprep.subr.bf16.mxu1 %v1216_v42  ;;  %1177 = vmatprep.subr.bf16.mxu0 %v1216_v42 }
 0x116   :  { %1158 = vmatpush3.bf16.msra.mxu1 %v1216_v42  ;;  %1178 = vmatpush3.bf16.msra.mxu0 %v1216_v42 }
 0x1cb   :  { %v1007_v53 = vpop.f32.mrb[4].mxu1  ;;  %v1073_v54 = vpop.f32.mrb[6].mxu0 }
 0x1cc   :  { %v356_v55 = vpop.f32.mrb[5].mxu1  ;;  %v620_v56 = vpop.f32.mrb[7].mxu0  ;;  %v406_v59 = vmax.f32 %v1007_v53, 0.0  ;;  %v670_v60 = vmax.f32 %v1073_v54, 0.0 }
 0x1cd   :  { %v405_v57 = vmax.f32 %v356_v55, 0.0  ;;  %v669_v58 = vmax.f32 %v620_v56, 0.0 }
 0x1cf   :  { %v1010_v61 = vpop.f32.mrb[6].mxu1  ;;  %1052 = vmatprep.mubr.f32.mxu1 %v405_v57  ;;  %v1076_v62 = vpop.f32.mrb[8].mxu0  ;;  %1118 = vmatprep.mubr.f32.mxu0 %v669_v58 }
 0x1d0   :  { %v366_v63 = vpop.f32.mrb[7].mxu1  ;;  %1053 = vmatmul.mubr.f32.vlgmr.msra.gmra.mrb[14].mxu1 %v406_v59  ;;  %v630_v0 = vpop.f32.mrb[9].mxu0  ;;  %1119 = vmatmul.mubr.f32.vlgmr.msra.gmra.mrb[16].mxu0 %v670_v60  ;;  %v408_v3 = vmax.f32 %v1010_v61, 0.0  ;;  %v672_v4 = vmax.f32 %v1076_v62, 0.0 }
 0x1d1   :  { %v407_v1 = vmax.f32 %v366_v63, 0.0  ;;  %v671_v2 = vmax.f32 %v630_v0, 0.0 }
 0x1d3   :  { %v1013_v5 = vpop.f32.mrb[8].mxu1  ;;  %1055 = vmatprep.mubr.f32.mxu1 %v407_v1  ;;  %v1079_v6 = vpop.f32.mrb[10].mxu0  ;;  %1121 = vmatprep.mubr.f32.mxu0 %v671_v2 }
 0x1d4   :  { %v410_v7 = vmax.f32 %v1013_v5, 0.0  ;;  %v674_v8 = vmax.f32 %v1079_v6, 0.0  ;;  %v376_v9 = vpop.f32.mrb[9].mxu1  ;;  %1056 = vmatmul.mubr.f32.gmra.mrb[16].mxu1 %v408_v3  ;;  %v640_v10 = vpop.f32.mrb[11].mxu0  ;;  %1122 = vmatmul.mubr.f32.gmra.mrb[18].mxu0 %v672_v4 }
 0x1d5   :  { %v409_v11 = vmax.f32 %v376_v9, 0.0  ;;  %v673_v12 = vmax.f32 %v640_v10, 0.0 }
 0x1d7   :  { %v1016_v13 = vpop.f32.mrb[10].mxu1  ;;  %1058 = vmatprep.mubr.f32.mxu1 %v409_v11  ;;  %v1082_v14 = vpop.f32.mrb[12].mxu0  ;;  %1124 = vmatprep.mubr.f32.mxu0 %v673_v12 }
 0x1d8   :  { %v412_v15 = vmax.f32 %v1016_v13, 0.0  ;;  %v676_v16 = vmax.f32 %v1082_v14, 0.0  ;;  %v386_v17 = vpop.f32.mrb[11].mxu1  ;;  %1059 = vmatmul.mubr.f32.gmra.mrb[18].mxu1 %v410_v7  ;;  %v650_v18 = vpop.f32.mrb[13].mxu0  ;;  %1125 = vmatmul.mubr.f32.gmra.mrb[20].mxu0 %v674_v8 }
 0x1d9   :  { %v411_v19 = vmax.f32 %v386_v17, 0.0  ;;  %v675_v20 = vmax.f32 %v650_v18, 0.0 }
 0x1db   :  { %v1019_v21 = vpop.f32.mrb[12].mxu1  ;;  %1061 = vmatprep.mubr.f32.mxu1 %v411_v19  ;;  %v1085_v22 = vpop.f32.mrb[14].mxu0  ;;  %1127 = vmatprep.mubr.f32.mxu0 %v675_v20 }
 0x1dc   :  { %v414_v23 = vmax.f32 %v1019_v21, 0.0  ;;  %v678_v24 = vmax.f32 %v1085_v22, 0.0  ;;  %v396_v25 = vpop.f32.mrb[13].mxu1  ;;  %1062 = vmatmul.mubr.f32.gmra.mrb[20].mxu1 %v412_v15  ;;  %v660_v26 = vpop.f32.mrb[15].mxu0  ;;  %1128 = vmatmul.mubr.f32.gmra.mrb[22].mxu0 %v676_v16 }
 0x1dd   :  { %v413_v27 = vmax.f32 %v396_v25, 0.0  ;;  %v677_v28 = vmax.f32 %v660_v26, 0.0 }
 0x1df   :  { %1064 = vmatprep.mubr.f32.mxu1 %v413_v27  ;;  %1130 = vmatprep.mubr.f32.mxu0 %v677_v28 }
 0x1e0   :  { %1065 = vmatmul.mubr.f32.gmra.mrb[22].mxu1 %v414_v23  ;;  %1131 = vmatmul.mubr.f32.gmra.mrb[24].mxu0 %v678_v24 }
 0x2a3   :  { %v1054_v29 = vpop.f32.mrb[14].mxu1  ;;  %v1120_v30 = vpop.f32.mrb[16].mxu0 }
 0x2a4   :  { %v531_v31 = vmul.f32 0.007812461, %v1054_v29  ;;  %v795_v32 = vmul.f32 0.007812461, %v1120_v30  ;;  %v481_v33 = vpop.f32.mrb[15].mxu1  ;;  %v745_v34 = vpop.f32.mrb[17].mxu0 }
 0x2a5   :  { %v530_v35 = vmul.f32 0.007812461, %v481_v33  ;;  %v794_v36 = vmul.f32 0.007812461, %v745_v34 }
 0x2a6   :  { %542 = vst.msk [vmem:[%s1402_s3 + $0x8] sm:$0xff] %vm540_vm2, %v531_v31  ;;  %816 = vrot.lane.b32.xlu0 %v795_v32, %s1217_s8 }
 0x2a7   :  { %541 = vst.msk [vmem:[%s1402_s3] sm:$0xff] %vm540_vm2, %v530_v35  ;;  %v1057_v37 = vpop.f32.mrb[16].mxu1  ;;  %v1123_v38 = vpop.f32.mrb[18].mxu0 }
 0x2a8   :  { %v533_v39 = vmul.f32 0.007812461, %v1057_v37  ;;  %v797_v40 = vmul.f32 0.007812461, %v1123_v38  ;;  %v491_v41 = vpop.f32.mrb[17].mxu1  ;;  %v755_v42 = vpop.f32.mrb[19].mxu0 }
 0x2a9   :  { %v532_v43 = vmul.f32 0.007812461, %v491_v41  ;;  %v796_v46 = vmul.f32 0.007812461, %v755_v42 }
 0x2aa   :  { %544 = vst.msk [vmem:[%s1402_s3 + $0x18] sm:$0xff] %vm540_vm2, %v533_v39  ;;  %814 = vrot.lane.b32.xlu0 %v794_v36, %s1217_s8  ;;  %820 = vrot.lane.b32.xlu1 %v797_v40, %s1217_s8 }
 0x2ab   :  { %543 = vst.msk [vmem:[%s1402_s3 + $0x10] sm:$0xff] %vm540_vm2, %v532_v43  ;;  %v1060_v44 = vpop.f32.mrb[18].mxu1  ;;  %v1126_v45 = vpop.f32.mrb[20].mxu0 }
 0x2ac   :  { %v535_v47 = vmul.f32 0.007812461, %v1060_v44  ;;  %v501_v48 = vpop.f32.mrb[19].mxu1  ;;  %v765_v49 = vpop.f32.mrb[21].mxu0  ;;  %v799_v54 = vmul.f32 0.007812461, %v1126_v45 }
 0x2ad   :  { %v534_v50 = vmul.f32 0.007812461, %v501_v48  ;;  %v798_v51 = vmul.f32 0.007812461, %v765_v49 }
 0x2ae   :  { %546 = vst.msk [vmem:[%s1402_s3 + $0x28] sm:$0xff] %vm540_vm2, %v535_v47  ;;  %818 = vrot.lane.b32.xlu1 %v796_v46, %s1217_s8 }
 0x2af   :  { %545 = vst.msk [vmem:[%s1402_s3 + $0x20] sm:$0xff] %vm540_vm2, %v534_v50  ;;  %822 = vrot.lane.b32.xlu0 %v798_v51, %s1217_s8  ;;  %v1063_v52 = vpop.f32.mrb[20].mxu1  ;;  %v1129_v53 = vpop.f32.mrb[22].mxu0 }
 0x2b0   :  { %v537_v55 = vmul.f32 0.007812461, %v1063_v52  ;;  %v511_v56 = vpop.f32.mrb[21].mxu1  ;;  %v775_v57 = vpop.f32.mrb[23].mxu0  ;;  %v801_v62 = vmul.f32 0.007812461, %v1129_v53 }
 0x2b1   :  { %v536_v58 = vmul.f32 0.007812461, %v511_v56  ;;  %v800_v59 = vmul.f32 0.007812461, %v775_v57 }
 0x2b2   :  { %548 = vst.msk [vmem:[%s1402_s3 + $0x38] sm:$0xff] %vm540_vm2, %v537_v55  ;;  %824 = vrot.lane.b32.xlu1 %v799_v54, %s1217_s8 }
 0x2b3   :  { %547 = vst.msk [vmem:[%s1402_s3 + $0x30] sm:$0xff] %vm540_vm2, %v536_v58  ;;  %826 = vrot.lane.b32.xlu0 %v800_v59, %s1217_s8  ;;  %v1066_v60 = vpop.f32.mrb[22].mxu1  ;;  %v1132_v61 = vpop.f32.mrb[24].mxu0 }
 0x2b4   :  { %v539_v63 = vmul.f32 0.007812461, %v1066_v60  ;;  %v521_v0 = vpop.f32.mrb[23].mxu1  ;;  %v785_v1 = vpop.f32.mrb[25].mxu0  ;;  %v803_v4 = vmul.f32 0.007812461, %v1132_v61 }
 0x2b5   :  { %v538_v2 = vmul.f32 0.007812461, %v521_v0  ;;  %v802_v3 = vmul.f32 0.007812461, %v785_v1 }
 0x2b6   :  { %550 = vst.msk [vmem:[%s1402_s3 + $0x48] sm:$0xff] %vm540_vm2, %v539_v63  ;;  %828 = vrot.lane.b32.xlu1 %v801_v62, %s1217_s8 }
 0x2b7   :  { %549 = vst.msk [vmem:[%s1402_s3 + $0x40] sm:$0xff] %vm540_vm2, %v538_v2  ;;  %830 = vrot.lane.b32.xlu0 %v802_v3, %s1217_s8 }
 0x2ba   :  { %832 = vrot.lane.b32.xlu1 %v803_v4, %s1217_s8 }
 0x318   :  { %v817_v5 = vpop.permute.xlu0 %816 }
 0x319   :  { %846 = vst.msk [vmem:[%s1402_s3 + $0x8] sm:$0xff] %vm844_vm3, %v817_v5 }
 0x31c   :  { %v815_v6 = vpop.permute.xlu0 %814  ;;  %v821_v7 = vpop.permute.xlu1 %820 }
 0x31d   :  { %845 = vst.msk [vmem:[%s1402_s3] sm:$0xff] %vm844_vm3, %v815_v6  ;;  %848 = vst.msk [vmem:[%s1402_s3 + $0x18] sm:$0xff] %vm844_vm3, %v821_v7 }
 0x320   :  { %v819_v8 = vpop.permute.xlu1 %818 }
 0x321   :  { %847 = vst.msk [vmem:[%s1402_s3 + $0x10] sm:$0xff] %vm844_vm3, %v819_v8  ;;  %v823_v9 = vpop.permute.xlu0 %822 }
 0x322   :  { %849 = vst.msk [vmem:[%s1402_s3 + $0x20] sm:$0xff] %vm844_vm3, %v823_v9 }
 0x324   :  { %v825_v10 = vpop.permute.xlu1 %824 }
 0x325   :  { %850 = vst.msk [vmem:[%s1402_s3 + $0x28] sm:$0xff] %vm844_vm3, %v825_v10  ;;  %v827_v11 = vpop.permute.xlu0 %826 }
 0x326   :  { %851 = vst.msk [vmem:[%s1402_s3 + $0x30] sm:$0xff] %vm844_vm3, %v827_v11 }
 0x328   :  { %v829_v12 = vpop.permute.xlu1 %828 }
 0x329   :  { %852 = vst.msk [vmem:[%s1402_s3 + $0x38] sm:$0xff] %vm844_vm3, %v829_v12  ;;  %v831_v13 = vpop.permute.xlu0 %830 }
 0x32a   :  { %853 = vst.msk [vmem:[%s1402_s3 + $0x40] sm:$0xff] %vm844_vm3, %v831_v13 }
 0x32c   :  { %v833_v14 = vpop.permute.xlu1 %832 }
 0x32d   :  { %854 = vst.msk [vmem:[%s1402_s3 + $0x48] sm:$0xff] %vm844_vm3, %v833_v14 }
 0x32e   :  { %859 = vsyncpa [#allocation3], 1 }

</bundles_post_ra>
